<compile_context>
chip_gen: v6e
topology: v6e:2x2x1
jax: 0.10.0
libtpu: 0.0.40
codegen_flags: <defaults>
</compile_context>

<pallas_src>
import functools

import jax
import jax.numpy as jnp
from jax import lax
from jax.experimental import pallas as pl
from jax.experimental.pallas import tpu as pltpu


_TARGET_BLOCK_BYTES = 2 << 20        # aim for >=2 MiB lane-dense blocks per grid step


def _round_up(x, m):
    return ((x + m - 1) // m) * m


def _cdiv(a, b):
    return (a + b - 1) // b


@functools.lru_cache(maxsize=None)
def _auto_vmem_limit_bytes():
    """Generation-dependent VMEM budget (~75% of physical per-core VMEM).
    v5e/v6e (128 MiB) -> 96 MiB; v7x (64 MiB per TC) -> 48 MiB.  Falls back to the
    conservative v7x figure if the hardware query is unavailable."""
    vmem = None
    try:
        info = pltpu.get_tpu_info()
        vmem = getattr(info, "vmem_capacity_bytes", None)
    except Exception:
        vmem = None
    if not vmem:
        vmem = 64 * 1024 * 1024
    return min((int(vmem) * 3) // 4, 112 * 1024 * 1024)


def _pick_batch_tile(batch, per_elem_bytes, cap_bytes):
    """Pick a batch tile: prefer >=2 grid steps (megacore sharding + DMA overlap)
    whenever batch allows, then the smallest tile that reaches the ~2 MiB block
    target, else the largest tile that fits the cap."""
    divisors = [d for d in range(1, batch + 1) if batch % d == 0]
    fitting = [d for d in divisors if d * per_elem_bytes <= cap_bytes]
    if not fitting:
        return 1
    multi = [d for d in fitting if batch // d >= 2]
    pool = multi if multi else fitting
    reach = [d for d in pool if d * per_elem_bytes >= _TARGET_BLOCK_BYTES]
    return min(reach) if reach else max(pool)


def _se_mlp(pooled, w1_ref, b1_ref, w2t_ref, b2_ref):
    """Squeeze/excite MLP + sigmoid.  pooled: (Bt, C) f32 -> (Bt, C) f32 scales."""
    w1 = w1_ref[...]              # (Cr, C)
    w2t = w2t_ref[...]            # (Cr, C) == w2^T
    cr, c = w1.shape
    if c >= 512 or cr >= 64:
        # MXU path for non-trivial channel counts: keeps the serial
        # pool->MLP->sigmoid chain short while the MXU is otherwise idle.
        h = lax.dot_general(pooled, w1, (((1,), (1,)), ((), ())),
                            preferred_element_type=jnp.float32) + b1_ref[...]
        h = jnp.maximum(h, 0.0)                                          # (Bt, Cr)
        s = jnp.dot(h, w2t, preferred_element_type=jnp.float32) + b2_ref[...]
    else:
        # VPU/XLU path: operands are too narrow to be worth MXU push/pop latency.
        h = jnp.sum(pooled[:, None, :] * w1[None, :, :], axis=-1) + b1_ref[...]
        h = jnp.maximum(h, 0.0)                                          # (Bt, Cr)
        s = jnp.sum(h[:, :, None] * w2t[None, :, :], axis=1) + b2_ref[...]
    return jax.nn.sigmoid(s)                                             # (Bt, C)


def _fused_kernel(inv_hw, x_ref, w1_ref, b1_ref, w2t_ref, b2_ref, o_ref):
    """One grid step handles a (Bt, C, HW) slab: pool + SE-MLP + scale, fused."""
    # Global average pool: f32 accumulation fused into the lane reduction (the block
    # cap leaves headroom in case Mosaic materializes f32 temporaries for the cast).
    pooled = jnp.sum(x_ref[...].astype(jnp.float32), axis=-1) * inv_hw   # (Bt, C)
    s = _se_mlp(pooled, w1_ref, b1_ref, w2t_ref, b2_ref)                 # (Bt, C) f32
    # Channel-wise scale in the input dtype (no f32 copy of the bulk tile).
    o_ref[...] = (x_ref[...] * s.astype(o_ref.dtype)[:, :, None]).astype(o_ref.dtype)


def _pool_mlp_kernel(inv_hw, hw_true, hw_tile, needs_mask,
                     x_ref, w1_ref, b1_ref, w2t_ref, b2_ref, s_ref, acc_ref):
    """Pass 1 (tiled HW): accumulate channel sums, emit sigmoid scales at the last tile.
    The last (partial) tile is masked in-kernel against the true HW, so no padded copy
    of x is needed and out-of-bounds garbage never reaches the accumulator."""
    hw_idx = pl.program_id(1)

    @pl.when(hw_idx == 0)
    def _init():
        acc_ref[...] = jnp.zeros_like(acc_ref)

    xv = x_ref[...].astype(jnp.float32)                                  # (1, C, T)
    if needs_mask:  # static Python flag: only emitted when HW % hw_tile != 0
        lane = lax.broadcasted_iota(jnp.int32, x_ref.shape, 2) + hw_idx * hw_tile
        xv = jnp.where(lane < hw_true, xv, 0.0)
    acc_ref[...] += jnp.sum(xv, axis=-1)                                 # (1, C)

    @pl.when(hw_idx == pl.num_programs(1) - 1)
    def _finalize():
        pooled = acc_ref[...] * inv_hw                                   # (1, C)
        s = _se_mlp(pooled, w1_ref, b1_ref, w2t_ref, b2_ref)             # (1, C)
        s_ref[...] = s[:, None, :]                                       # (1, 1, C)


def _scale_kernel(x_ref, s_ref, o_ref):
    """Pass 2 (tiled HW): out = x * scale.  Out-of-bounds lanes of the partial last
    block are dropped by Pallas on store, so no masking is needed here."""
    s = s_ref[...][:, 0, :]                                              # (1, C) f32
    o_ref[...] = (x_ref[...] * s.astype(o_ref.dtype)[:, :, None]).astype(o_ref.dtype)


def ca_layer(x, w1, b1, w2, b2, *, max_block_mib=None):
    """Channel attention.  x: (B, C, H, W) NCHW.
    w1: (C//r, C[,1,1]), b1: (C//r,), w2: (C, C//r[,1,1]), b2: (C,) (PyTorch 1x1-conv
    layouts).  Returns x * sigmoid(conv2(relu(conv1(avgpool(x)))))."""
    B, C, H, W = x.shape
    HW = H * W
    Cr = w1.shape[0]
    itemsize = jnp.dtype(x.dtype).itemsize
    vmem_limit = _auto_vmem_limit_bytes()
    if max_block_mib is None:
        cap = vmem_limit // 6          # 2-3 in + 2 out buffers + headroom fit the limit
    else:
        cap = int(max_block_mib * (1 << 20))
    cap = max(cap, _round_up(C, 8) * 128 * itemsize)
    inv_hw = 1.0 / float(HW)

    # Lane-major parameter layouts: large dim (C) last, biases as rows (1, Cr)/(1, C).
    w1m = w1.reshape(Cr, C)
    w2t = jnp.transpose(w2.reshape(C, Cr))                 # (Cr, C)
    b1r = b1.reshape(1, Cr)
    b2r = b2.reshape(1, C)
    param_bytes = int((2 * Cr * C + Cr + C) * 4)

    param_specs = [
        pl.BlockSpec((Cr, C), lambda *_: (0, 0)),
        pl.BlockSpec((1, Cr), lambda *_: (0, 0)),
        pl.BlockSpec((Cr, C), lambda *_: (0, 0)),
        pl.BlockSpec((1, C), lambda *_: (0, 0)),
    ]

    x_flat = x.reshape(B, C, HW)                           # contiguous reshape: no copy
    x_bytes = B * C * HW * itemsize
    mlp_flops = 4 * B * Cr * C

    # Physical VMEM footprint of one batch element's (C, HW) slab ((8,128) tiling).
    per_elem = _round_up(C, 8) * _round_up(HW, 128) * itemsize

    if per_elem <= cap:
        # ------------ Fused single pass: whole (C, HW) slab per batch element. -------
        bt = _pick_batch_tile(B, per_elem, cap)
        n_b = B // bt

        x_spec = pl.BlockSpec((bt, C, HW), lambda b: (b, 0, 0))
        if n_b >= 3:
            # 3-deep input buffering hides the serial pool->MLP->sigmoid latency before
            # the store; 3 in + 2 out buffers <= 5 * (vmem_limit//6) stays under limit.
            x_spec = pl.BlockSpec((bt, C, HW), lambda b: (b, 0, 0),
                                  pipeline_mode=pl.Buffered(3))

        out_flat = pl.pallas_call(
            functools.partial(_fused_kernel, inv_hw),
            out_shape=jax.ShapeDtypeStruct((B, C, HW), x.dtype),
            grid_spec=pltpu.PrefetchScalarGridSpec(
                num_scalar_prefetch=0,
                grid=(n_b,),
                in_specs=[x_spec] + param_specs,
                out_specs=pl.BlockSpec((bt, C, HW), lambda b: (b, 0, 0)),
            ),
            compiler_params=pltpu.CompilerParams(
                dimension_semantics=("parallel",),
                vmem_limit_bytes=vmem_limit),
            cost_estimate=pl.CostEstimate(
                flops=2 * B * C * HW + mlp_flops,
                transcendentals=B * C,
                bytes_accessed=2 * x_bytes + param_bytes),
        )(x_flat, w1m, b1r, w2t, b2r)
    else:
        # ------------ Two passes: tile HW so VMEM use is independent of image size. --
        bytes_per_lane = _round_up(C, 8) * itemsize
        hw_budget = max(128, (cap // bytes_per_lane) // 128 * 128)
        n_hw = _cdiv(HW, hw_budget)
        hw_tile = _round_up(_cdiv(HW, n_hw), 128)          # equalized tiles, minimal
        n_hw = _cdiv(HW, hw_tile)                          # overshoot (no pad-to-tile)
        needs_mask = (HW % hw_tile) != 0

        # Pass 1: per-(batch, channel) sigmoid scales, shape (B, 1, C) f32.
        scales = pl.pallas_call(
            functools.partial(_pool_mlp_kernel, inv_hw, HW, hw_tile, needs_mask),
            out_shape=jax.ShapeDtypeStruct((B, 1, C), jnp.float32),
            grid_spec=pltpu.PrefetchScalarGridSpec(
                num_scalar_prefetch=0,
                grid=(B, n_hw),
                in_specs=[pl.BlockSpec((1, C, hw_tile), lambda b, k: (b, 0, k))]
                         + param_specs,
                out_specs=pl.BlockSpec((1, 1, C), lambda b, k: (b, 0, 0)),
                scratch_shapes=[pltpu.VMEM((1, C), jnp.float32)],
            ),
            compiler_params=pltpu.CompilerParams(
                dimension_semantics=("parallel", "arbitrary"),
                vmem_limit_bytes=vmem_limit),
            cost_estimate=pl.CostEstimate(
                flops=B * C * HW + mlp_flops,
                transcendentals=B * C,
                bytes_accessed=x_bytes + B * C * 4 + param_bytes),
        )(x_flat, w1m, b1r, w2t, b2r)

        # Pass 2: re-stream x and apply the per-channel scale (both axes parallel).
        out_flat = pl.pallas_call(
            _scale_kernel,
            out_shape=jax.ShapeDtypeStruct((B, C, HW), x.dtype),
            grid_spec=pltpu.PrefetchScalarGridSpec(
                num_scalar_prefetch=0,
                grid=(B, n_hw),
                in_specs=[
                    pl.BlockSpec((1, C, hw_tile), lambda b, k: (b, 0, k)),
                    pl.BlockSpec((1, 1, C), lambda b, k: (b, 0, 0)),
                ],
                out_specs=pl.BlockSpec((1, C, hw_tile), lambda b, k: (b, 0, k)),
            ),
            compiler_params=pltpu.CompilerParams(
                dimension_semantics=("parallel", "parallel"),
                vmem_limit_bytes=vmem_limit),
            cost_estimate=pl.CostEstimate(
                flops=B * C * HW,
                transcendentals=0,
                bytes_accessed=2 * x_bytes + B * C * 4),
        )(x_flat, scales)

    return out_flat.reshape(B, C, H, W)


def ca_layer_ref(x, w1, b1, w2, b2):
    """Pure-JAX reference matching the PyTorch forward."""
    pooled = jnp.mean(x, axis=(2, 3), keepdims=True)                     # (B, C, 1, 1)
    y = jnp.einsum('oc,bchw->bohw', w1, pooled) + b1.reshape(1, -1, 1, 1)
    y = jax.nn.relu(y)
    y = jnp.einsum('oc,bchw->bohw', w2, y) + b2.reshape(1, -1, 1, 1)
    y = jax.nn.sigmoid(y)
    return x * y


if __name__ == "__main__":
    # Shapes consistent with the module: channel=32, reduction=16 -> hidden=2.
    B, C, reduction = 2, 32, 16
    Cr = C // reduction

    key = jax.random.PRNGKey(0)
    kx, kw1, kb1, kw2, kb2, kx2, kx3 = jax.random.split(key, 7)

    # PyTorch Conv2d-1x1 layouts: weight (out_ch, in_ch), bias (out_ch,).
    w1 = jax.random.normal(kw1, (Cr, C), dtype=jnp.float32) * 0.1
    b1 = jax.random.normal(kb1, (Cr,), dtype=jnp.float32) * 0.1
    w2 = jax.random.normal(kw2, (C, Cr), dtype=jnp.float32) * 0.1
    b2 = jax.random.normal(kb2, (C,), dtype=jnp.float32) * 0.1

    # 1) Fused single-pass path (HW a multiple of 128, >=2 parallel grid steps).
    x = jax.random.normal(kx, (B, C, 16, 16), dtype=jnp.float32)
    out = jax.block_until_ready(ca_layer(x, w1, b1, w2, b2))
    ref = ca_layer_ref(x, w1, b1, w2, b2)
    assert out.shape == x.shape
    assert jnp.allclose(out, ref, atol=1e-4, rtol=1e-4), "fused path mismatch"

    # 2) Fused path with HW NOT a multiple of 128 (no wrapper pad / slice copies).
    x2 = jax.random.normal(kx2, (B, C, 17, 15), dtype=jnp.float32)
    out2 = jax.block_until_ready(ca_layer(x2, w1, b1, w2, b2))
    ref2 = ca_layer_ref(x2, w1, b1, w2, b2)
    assert out2.shape == x2.shape
    assert jnp.allclose(out2, ref2, atol=1e-4, rtol=1e-4), "fused ragged-HW mismatch"

    # 3) Two-pass (tiled HW) path with a ragged tail, forced via a tiny block budget.
    x3 = jax.random.normal(kx3, (B, C, 33, 32), dtype=jnp.float32)
    out3 = jax.block_until_ready(ca_layer(x3, w1, b1, w2, b2, max_block_mib=0.05))
    ref3 = ca_layer_ref(x3, w1, b1, w2, b2)
    assert out3.shape == x3.shape
    assert jnp.allclose(out3, ref3, atol=1e-4, rtol=1e-4), "two-pass path mismatch"

    print("KERNEL_OK")
</pallas_src>

<mosaic_0001>
module attributes {stable_mosaic.version = 11 : i64} {
  func.func @_fused_kernel(%arg0: i32, %arg1: memref<1x32x256xf32, #tpu.memory_space<vmem>>, %arg2: memref<2x32xf32, #tpu.memory_space<vmem>>, %arg3: memref<1x2xf32, #tpu.memory_space<vmem>>, %arg4: memref<2x32xf32, #tpu.memory_space<vmem>>, %arg5: memref<1x32xf32, #tpu.memory_space<vmem>>, %arg6: memref<1x32x256xf32, #tpu.memory_space<vmem>>) attributes {dimension_semantics = [#tpu.dimension_semantics<parallel>], iteration_bounds = array<i64: 2>, scalar_prefetch = 0 : i64, scratch_operands = 0 : i64, tpu.core_type = #tpu.core_type<tc>, window_params = [{transform_indices = @transform_0, window_bounds = array<i64: 1, 32, 256>}, {pipeline_mode = #tpu.pipeline_mode<synchronous>, transform_indices = @transform_1, window_bounds = array<i64: 2, 32>}, {pipeline_mode = #tpu.pipeline_mode<synchronous>, transform_indices = @transform_2, window_bounds = array<i64: 1, 2>}, {pipeline_mode = #tpu.pipeline_mode<synchronous>, transform_indices = @transform_3, window_bounds = array<i64: 2, 32>}, {pipeline_mode = #tpu.pipeline_mode<synchronous>, transform_indices = @transform_4, window_bounds = array<i64: 1, 32>}, {transform_indices = @transform_5, window_bounds = array<i64: 1, 32, 256>}]} {
    %c0 = arith.constant 0 : index
    %c0_0 = arith.constant 0 : index
    %c0_1 = arith.constant 0 : index
    %0 = vector.load %arg1[%c0, %c0_0, %c0_1] : memref<1x32x256xf32, #tpu.memory_space<vmem>>, vector<1x32x256xf32>
    %cst = arith.constant dense<0.000000e+00> : vector<1x32xf32>
    %1 = vector.multi_reduction <add>, %0, %cst [2] : vector<1x32x256xf32> to vector<1x32xf32>
    %cst_2 = arith.constant 3.906250e-03 : f32
    %2 = vector.broadcast %cst_2 : f32 to vector<1x32xf32>
    %3 = arith.mulf %1, %2 : vector<1x32xf32>
    %c0_3 = arith.constant 0 : index
    %c0_4 = arith.constant 0 : index
    %4 = vector.load %arg2[%c0_3, %c0_4] : memref<2x32xf32, #tpu.memory_space<vmem>>, vector<2x32xf32>
    %c0_5 = arith.constant 0 : index
    %c0_6 = arith.constant 0 : index
    %5 = vector.load %arg4[%c0_5, %c0_6] : memref<2x32xf32, #tpu.memory_space<vmem>>, vector<2x32xf32>
    %6 = vector.shape_cast %3 : vector<1x32xf32> to vector<1x1x32xf32>
    %7 = vector.shape_cast %4 : vector<2x32xf32> to vector<1x2x32xf32>
    %8 = vector.broadcast %6 : vector<1x1x32xf32> to vector<1x2x32xf32>
    %9 = arith.mulf %8, %7 : vector<1x2x32xf32>
    %cst_7 = arith.constant dense<0.000000e+00> : vector<1x2xf32>
    %10 = vector.multi_reduction <add>, %9, %cst_7 [2] : vector<1x2x32xf32> to vector<1x2xf32>
    %c0_8 = arith.constant 0 : index
    %c0_9 = arith.constant 0 : index
    %11 = vector.load %arg3[%c0_8, %c0_9] : memref<1x2xf32, #tpu.memory_space<vmem>>, vector<1x2xf32>
    %12 = arith.addf %10, %11 : vector<1x2xf32>
    %cst_10 = arith.constant 0.000000e+00 : f32
    %13 = vector.broadcast %cst_10 : f32 to vector<1x2xf32>
    %14 = arith.maximumf %12, %13 : vector<1x2xf32>
    %15 = vector.shape_cast %14 : vector<1x2xf32> to vector<1x2x1xf32>
    %16 = vector.shape_cast %5 : vector<2x32xf32> to vector<1x2x32xf32>
    %17 = vector.broadcast %15 : vector<1x2x1xf32> to vector<1x2x32xf32>
    %18 = arith.mulf %17, %16 : vector<1x2x32xf32>
    %cst_11 = arith.constant dense<0.000000e+00> : vector<1x32xf32>
    %19 = vector.multi_reduction <add>, %18, %cst_11 [1] : vector<1x2x32xf32> to vector<1x32xf32>
    %c0_12 = arith.constant 0 : index
    %c0_13 = arith.constant 0 : index
    %20 = vector.load %arg5[%c0_12, %c0_13] : memref<1x32xf32, #tpu.memory_space<vmem>>, vector<1x32xf32>
    %21 = arith.addf %19, %20 : vector<1x32xf32>
    %22 = arith.negf %21 : vector<1x32xf32>
    %23 = math.exp %22 : vector<1x32xf32>
    %cst_14 = arith.constant 1.000000e+00 : f32
    %24 = vector.broadcast %cst_14 : f32 to vector<1x32xf32>
    %25 = arith.addf %24, %23 : vector<1x32xf32>
    %26 = arith.divf %24, %25 : vector<1x32xf32>
    %c0_15 = arith.constant 0 : index
    %c0_16 = arith.constant 0 : index
    %c0_17 = arith.constant 0 : index
    %27 = vector.load %arg1[%c0_15, %c0_16, %c0_17] : memref<1x32x256xf32, #tpu.memory_space<vmem>>, vector<1x32x256xf32>
    %28 = vector.shape_cast %26 : vector<1x32xf32> to vector<1x32x1xf32>
    %29 = vector.broadcast %28 : vector<1x32x1xf32> to vector<1x32x256xf32>
    %30 = arith.mulf %27, %29 : vector<1x32x256xf32>
    %c0_18 = arith.constant 0 : index
    %c0_19 = arith.constant 0 : index
    %c0_20 = arith.constant 0 : index
    %31 = vector.load %arg6[%c0_18, %c0_19, %c0_20] : memref<1x32x256xf32, #tpu.memory_space<vmem>>, vector<1x32x256xf32>
    tpu.vector_store %arg6[%c0_18, %c0_19, %c0_20], %30 {strides = array<i32>} : memref<1x32x256xf32, #tpu.memory_space<vmem>>, vector<1x32x256xf32>,
    return
  }
  func.func @transform_0(%arg0: i32) -> (i32, i32, i32) {
    %c0_i32 = arith.constant 0 : i32
    %c0_i32_0 = arith.constant 0 : i32
    %c0_i32_1 = arith.constant 0 : i32
    return %arg0, %c0_i32, %c0_i32_0 : i32, i32, i32
  }
  func.func @transform_1(%arg0: i32) -> (i32, i32) {
    %c0_i32 = arith.constant 0 : i32
    %c0_i32_0 = arith.constant 0 : i32
    %c0_i32_1 = arith.constant 0 : i32
    return %c0_i32, %c0_i32_0 : i32, i32
  }
  func.func @transform_2(%arg0: i32) -> (i32, i32) {
    %c0_i32 = arith.constant 0 : i32
    %c0_i32_0 = arith.constant 0 : i32
    %c0_i32_1 = arith.constant 0 : i32
    return %c0_i32, %c0_i32_0 : i32, i32
  }
  func.func @transform_3(%arg0: i32) -> (i32, i32) {
    %c0_i32 = arith.constant 0 : i32
    %c0_i32_0 = arith.constant 0 : i32
    %c0_i32_1 = arith.constant 0 : i32
    return %c0_i32, %c0_i32_0 : i32, i32
  }
  func.func @transform_4(%arg0: i32) -> (i32, i32) {
    %c0_i32 = arith.constant 0 : i32
    %c0_i32_0 = arith.constant 0 : i32
    %c0_i32_1 = arith.constant 0 : i32
    return %c0_i32, %c0_i32_0 : i32, i32
  }
  func.func @transform_5(%arg0: i32) -> (i32, i32, i32) {
    %c0_i32 = arith.constant 0 : i32
    %c0_i32_0 = arith.constant 0 : i32
    %c0_i32_1 = arith.constant 0 : i32
    return %arg0, %c0_i32, %c0_i32_0 : i32, i32, i32
  }
}

</mosaic_0001>

<bundles_post_ra>
// kernel: tpu_custom_call.1
= control target key start
LH: loop header
LB: loop body
LE: loop exit
PB: predicated region body
PF: predicated region fallthrough
CT: control target
= control target key end

     0   :  { %10 = vsyncpa [#allocation3], 0  ;;  %s1075_s0 = inlined_call_operand.hbm [shape: f32[2,32,256], index: 0, kind: input, shape index: {}]   ;;  %s1076_s1 = inlined_call_operand.hbm [shape: f32[2,32], index: 1, kind: input, shape index: {}]   ;;  %s1077_s2 = inlined_call_operand.vmem [shape: f32[1,2], index: 2, kind: input, shape index: {}]   ;;  %s1078_s3 = inlined_call_operand.vmem [shape: f32[2,32], index: 3, kind: input, shape index: {}]   ;;  %s1079_s4 = inlined_call_operand.vmem [shape: f32[1,32], index: 4, kind: input, shape index: {}]   ;;  %s1080_s5 = inlined_call_operand.hbm [shape: f32[2,32,256], index: 5, kind: output, shape index: {}]  }
   0x1   :  { %12 = vsyncpa [#allocation3 + $0x1], 0 }
   0x2   :  { %13 = vsyncpa [#allocation6], 0 }
   0x3   :  { %14 = vsyncpa [#allocation4], 0 }
   0x4   :  { %16 = vsyncpa [#allocation4 + $0x1], 0  ;;  %s837_s18 = smov 0   ;;  %s839_s19 = smov 0  }
   0x5   :  { %s841_s20 = smov 0   ;;  %s843_s21 = smov 0  }
   0x6 LB: > { %s858_s22 = sadd.s32 4294967295, %s797_s21   ;;  %s587_s23 = sadd.s32 4294967294, %s797_s21   ;;  %s797_s21 = sphi %s843_s21, %s1103_s21   ;;  %s793_s20 = sphi %s841_s20, %s1102_s20   ;;  %s789_s19 = sphi %s839_s19, %s1101_s19   ;;  %s785_s18 = sphi %s837_s18, %s1100_s18  }
   0x7   : > { %s862_s24 = sadd.s32 1, %s797_s21   ;;  %s29_s25 = sadd.s32 1, %s793_s20 }
   0x8   : > { %s26_s26 = ssub.s32 %s797_s21, %s862_s24  ;;  %p36_p0 = scmp.ne.s32.totalorder %s793_s20, %s789_s19 }
   0x9   : > { %p27_p1 = scmp.eq.s32.totalorder %s26_s26, 0  ;;  %p37_p2 = scmp.eq.s32.totalorder %s797_s21, 0 }
   0xa   : > { %p42_p3 = scmp.ne.s32.totalorder %s789_s19, %s785_s18  ;;  %p1081_p4 = scmp.eq.s32.totalorder %s858_s22, 0 }
   0xb   : > { %s874_s27 = scalar_select %p27_p1, %s793_s20, %s29_s25  }
   0xc   : > { %p876_p5 = por %p37_p2, %p36_p0  ;;  %p882_p6 = por %p1081_p4, %p42_p3 }
   0xd   : > { %p150_p7 = scmp.eq.s32.totalorder %s858_s22, 1  ;;  %p156_p8 = scmp.eq.s32.totalorder %s587_s23, 1 }
   0xe   : > { %s1086_s29 = scalar_select %p882_p6, 1, 0 }
   0xf   : > { %p588_p9 = scmp.ge.s32.totalorder %s797_s21, 1  ;;  %p163_p10 = scmp.lt.s32.totalorder %s797_s21, 3 }
  0x10   : > { %p889_p11 = por %p150_p7, %p36_p0  ;;  %p893_p12 = por %p156_p8, %p42_p3 }
  0x11   : > { %p897_p13 = pnand %p588_p9, %p163_p10  ;;  %s799_s8 = smov [#allocation5]  }
  0x12   : > { %s1087_s30 = scalar_select %p889_p11, 1, 0 }
  0x13   : > { %s1088_s6 = scalar_select %p893_p12, 1, 0 }
  0x14   : > { %s1089_s7 = scalar_select %p897_p13, 1, 0 }
  0x15   : > { %p615_p2 = pneg %p897_p13  ;;  %s176_s9 = sshll.u32 %s799_s8, 4  ;;  %s177_s9 = int_to_ptr.vmem [resolvable:$true] %s176_s9 }
  0x16   : > { %p628_p4 = scmp.lt.s32.totalorder %s797_s21, 2  ;;  %p1090_p0 = scmp.eq.s32.totalorder %s858_s22, 0 }
  0x17   : > { %s196_s11 = sand.u32 1, %s793_s20   ;;  %s686_s14 = scalar_lea.vmem %s177_s9, 32 }
  0x18   : > { %p907_p7 = pnand %p615_p2, %p1090_p0  ;;  %p914_p3 = pnand %p628_p4, %p876_p5 }
  0x19   : > { %s591_s13 = sshll.u32 %s196_s11, 6  ;;  %p687_p9 = scmp.ne.s32.totalorder %s177_s9, %s686_s14 }
  0x1a   : > { %p677_p8 = pneg %p907_p7  ;;  %p694_p12 = scmp.lt.s32.totalorder %s177_s9, %s177_s9 }
  0x1b   : > { %p695_p11 = scmp.lt.s32.totalorder %s686_s14, %s686_s14 }
  0x1c   : > { %p689_p10 = pnand %p687_p9, %p677_p8 }
  0x1d   : > { %p696_p2 = por %p695_p11, %p694_p12 }
  0x1e   : > { %p690_p1 = pneg %p689_p10 }
  0x20   : > { %p697_p0 = pnand %p696_p2, %p690_p1 }
  0x22   : > { %700 = shalt.err (!%p697_p0)
}
  0x23   : > { %618 = dma.hbm_to_vmem [thread:$0]  (!%p907_p7), %s1076_s1, 32, %s177_s9, [#allocation6]  }
  0x24   : > { %s605_s17 = sshll.u32 %s797_s21, 10  ;;  %s200_s23 = scalar_lea.vmem [#allocation2], %s591_s13 }
  0x25   : > { %s207_s25 = sshll.u32 %s200_s23, 4  ;;  %s929_s8 = scalar_lea.hbm %s1075_s0, %s605_s17  ;;  %s931_s25 = int_to_ptr.vmem [resolvable:$true] %s207_s25 }
  0x26   : > { %s933_s10 = scalar_lea.sflag [#allocation3], %s196_s11  ;;  %s701_s14 = scalar_lea.hbm %s929_s8, 1024 }
  0x27   : > { %p702_p4 = scmp.ne.s32.totalorder %s929_s8, %s701_s14  ;;  %p703_p5 = pneg %p914_p3 }
  0x28   : > { %s706_s15 = scalar_lea.hbm %s1075_s0, 2048  ;;  %p707_p1 = scmp.lt.s32.totalorder %s929_s8, %s1075_s0 }
  0x29   : > { %p704_p11 = pnand %p703_p5, %p702_p4  ;;  %p708_p7 = scmp.lt.s32.totalorder %s706_s15, %s701_s14 }
  0x2b   : > { %p705_p12 = pneg %p704_p11  ;;  %p709_p8 = por %p708_p7, %p707_p1 }
  0x2d   : > { %p710_p9 = pnand %p709_p8, %p705_p12 }
  0x2f   : > { %713 = shalt.err (!%p710_p9)
}
  0x30   : > { %s714_s11 = scalar_lea.vmem %s931_s25, 1024  ;;  %s800_s23 = smov [#allocation2]  }
  0x31   : > { %p715_p10 = scmp.ne.s32.totalorder %s931_s25, %s714_s11  ;;  %s719_s26 = sshll.u32 %s800_s23, 4  ;;  %s720_s26 = int_to_ptr.vmem [resolvable:$false] %s719_s26 }
  0x32   : > { %s721_s28 = scalar_lea.vmem %s720_s26, 2048  ;;  %p722_p4 = scmp.lt.s32.totalorder %s931_s25, %s720_s26 }
  0x33   : > { %p717_p2 = pnand %p715_p10, %p703_p5  ;;  %p723_p11 = scmp.lt.s32.totalorder %s721_s28, %s714_s11 }
  0x35   : > { %p718_p0 = pneg %p717_p2  ;;  %p724_p6 = por %p723_p11, %p722_p4 }
  0x37   : > { %p725_p13 = pnand %p724_p6, %p718_p0 }
  0x39   : > { %728 = shalt.err (!%p725_p13)
}
  0x3a   : > { %s801_s14 = smov 256   ;;  %s802_s9 = smov 16  }
  0x3b   : > { %622 = dma.hbm_to_vmem [thread:$0]  (!%p914_p3), %s929_s8, 1024, %s931_s25, %s933_s10, %s801_s14, %s801_s14, %s802_s9  }
  0x3c   : > { %p1093_p5 = scmp.ne.s32.totalorder %s1089_s7, 0 }
  0x3d   : > { %s957_s13 = sand.u32 (!%p1093_p5), 1, %s789_s19   ;;  %p1094_p6 = scmp.ne.s32.totalorder (!%p1093_p5), %s1086_s29, 0 }
  0x3e   : > { %219 = sbr.rel (%p1093_p5) target bundleno = 827 (0x33b), region = 40  ;;  %s595_s15 = sshll.u32 (!%p1093_p5), %s957_s13, 6 }
  0x3f   : > { %s222_s16 = scalar_lea.sflag (!%p1093_p5), [#allocation3], %s957_s13  ;;  %s225_s17 = scalar_lea.vmem (!%p1093_p5), [#allocation2], %s595_s15 }
  0x43   : > { %772 = dma.done.wait (%p1094_p6), %s222_s16, 1024  }
  0x44   : > { %774 = vsyncadd (%p1094_p6), %s222_s16, 4294966272  ;;  %p1095_p13 = scmp.eq.s32.totalorder %s858_s22, 0 }
  0x46   : > { %776 = dma.done.wait (%p1095_p13), [#allocation6], 32   ;;  %p1096_p3 = pmov %p1095_p13 }
  0x47   : > { %v971_v0 = vld [vmem:[%s225_s17 + $0x20] sm:$0xff]  ;;  %v973_v1 = vld [vmem:[%s225_s17 + $0x28] sm:$0xff]  ;;  %v981_v5 = vld [vmem:[%s225_s17 + $0x30] sm:$0xff]  ;;  %v283_v12 = vlaneseq  ;;  %v803_v18 = vmov 0   ;;  %vm380_vm0 = vcmask 130112   ;;  %vm387_vm1 = vcmask 195712  }
  0x48   : > { %778 = vsyncadd (%p1096_p3), [#allocation6], 4294967264  ;;  %v975_v2 = vld [vmem:[%s225_s17] sm:$0xff]  ;;  %v270_v3 = vadd.f32 %v973_v1, %v971_v0  ;;  %v979_v4 = vld [vmem:[%s225_s17 + $0x8] sm:$0xff]  ;;  %670 = vset.pattern.permute.xlu1 %v803_v18  ;;  %669 = vset.pattern.permute.xlu0 %v803_v18  ;;  %vm394_vm2 = vcmask 261312   ;;  %vm415_vm3 = vcmask 1041409  }
  0x49   : > { %v983_v6 = vld [vmem:[%s225_s17 + $0x38] sm:$0xff]  ;;  %v264_v7 = vadd.f32 %v979_v4, %v975_v2  ;;  %v987_v8 = vld [vmem:[%s225_s17 + $0x10] sm:$0xff]  ;;  %v995_v13 = vshrl.u32 %v283_v12, 7  ;;  %v280_v15 = vld [vmem:[#allocation5] sm:$0x3]  ;;  %v370_v46 = vand.u32 127, %v283_v12 }
  0x4a   : > { %v989_v9 = vld [vmem:[%s225_s17 + $0x18] sm:$0xff]  ;;  %271 = vadd.xlane.f32.xlu1 %v270_v3  ;;  %v273_v10 = vadd.f32 %v983_v6, %v981_v5  ;;  %v598_v44 = vld [vmem:[%s1077_s2] ss:$0 sm:$0xff]  ;;  %vm418_vm4 = vcmask 254976   ;;  %s255_s11 = scalar_lea.vmem [#allocation7], %s595_s15  ;;  %s606_s26 = sshll.u32 %s858_s22, 10 }
  0x4b   : > { %265 = vadd.xlane.f32.xlu0 %v264_v7  ;;  %v267_v11 = vadd.f32 %v989_v9, %v987_v8  ;;  %v285_v14 = vsub.s32 0, %v995_v13  ;;  %v304_v17 = vsub.s32 1, %v995_v13  ;;  %v375_v49 = vadd.s32 4294967288, %v370_v46  ;;  %s504_s23 = sshll.u32 %s255_s11, 4  ;;  %s1030_s9 = scalar_lea.hbm %s1080_s5, %s606_s26  ;;  %s1025_s23 = int_to_ptr.vmem [resolvable:$true] %s504_s23 }
  0x4c   : > { %v382_v50 = vadd.s32 4294967280, %v370_v46  ;;  %v389_v51 = vadd.s32 4294967272, %v370_v46  ;;  %v373_v55 = vsub.s32 %v370_v46, %v995_v13  ;;  %s491_s22 = scalar_lea.sflag [#allocation4], %s957_s13  ;;  %s729_s15 = scalar_lea.vmem %s1025_s23, 1024 }
  0x4d   : > { %v286_v16 = vrot.slane %v280_v15, %v285_v14  ;;  %v305_v19 = vrot.slane %v280_v15, %v304_v17  ;;  %v378_v54 = vsub.s32 %v375_v49, %v995_v13  ;;  %p730_p12 = scmp.ne.s32.totalorder %s1025_s23, %s729_s15  ;;  %p1097_p1 = scmp.ne.s32.totalorder %s1087_s30, 0 }
  0x4e   : > { %274 = vadd.xlane.f32.xlu1 %v273_v10  ;;  %v385_v56 = vsub.s32 %v382_v50, %v995_v13  ;;  %v392_v57 = vsub.s32 %v389_v51, %v995_v13  ;;  %s804_s16 = smov [#allocation7]  }
  0x4f   : > { %268 = vadd.xlane.f32.xlu0 %v267_v11  ;;  %p731_p7 = pnand %p730_p12, %p1097_p1  ;;  %s733_s17 = sshll.u32 %s804_s16, 4  ;;  %s734_s17 = int_to_ptr.vmem [resolvable:$false] %s733_s17 }
  0x50   : > { %s735_s29 = scalar_lea.vmem %s734_s17, 2048  ;;  %p736_p9 = scmp.lt.s32.totalorder %s1025_s23, %s734_s17 }
  0x51   : > { %p732_p8 = pneg %p731_p7  ;;  %p737_p10 = scmp.lt.s32.totalorder %s735_s29, %s729_s15 }
  0x53   : > { %p738_p2 = por %p737_p10, %p736_p9 }
  0x55   : > { %p739_p0 = pnand %p738_p2, %p732_p8 }
  0x5f   : > { %292 = vbcast.lane.b32.xlu1 %v286_v16, 264 }
  0x63   : > { %307 = vbcast.lane.b32.xlu1 %v305_v19, 256 }
  0x65   : > { %288 = vbcast.lane.b32.xlu0 %v286_v16, 256 }
  0x67   : > { %311 = vbcast.lane.b32.xlu1 %v305_v19, 264 }
  0x69   : > { %296 = vbcast.lane.b32.xlu0 %v286_v16, 272 }
  0x6b   : > { %315 = vbcast.lane.b32.xlu1 %v305_v19, 272 }
  0x6d   : > { %300 = vbcast.lane.b32.xlu0 %v286_v16, 280 }
  0x6f   : > { %319 = vbcast.lane.b32.xlu1 %v305_v19, 280 }
  0xd3   : > { %v272_v20 = vpop.xlane.xlu1 %271 }
  0xd4   : > { %v266_v21 = vpop.xlane.xlu0 %265  ;;  %v278_v33 = vmul.f32 0.00390625, %v272_v20 }
  0xd5   : > { %v276_v25 = vmul.f32 0.00390625, %v266_v21 }
  0xd7   : > { %v275_v22 = vpop.xlane.xlu1 %274 }
  0xd8   : > { %v269_v23 = vpop.xlane.xlu0 %268  ;;  %v279_v38 = vmul.f32 0.00390625, %v275_v22 }
  0xd9   : > { %v277_v24 = vmul.f32 0.00390625, %v269_v23 }
  0xdb   : > { %v293_v26 = vpop.permute.xlu1 %292 }
  0xdc   : > { %v330_v27 = vmul.f32 %v293_v26, %v277_v24  ;;  %v289_v28 = vpop.permute.xlu0 %288 }
  0xdd   : > { %v329_v29 = vmul.f32 %v289_v28, %v276_v25 }
  0xde   : > { %349 = vperm.xlu1 %670, %v330_v27   ;;  %v281_v27 = vld [vmem:[%s1078_s3] sm:$0x3] }
  0xdf   : > { %346 = vperm.xlu0 %669, %v329_v29   ;;  %v308_v30 = vpop.permute.xlu1 %307 }
  0xe0   : > { %v333_v31 = vmul.f32 %v308_v30, %v276_v25  ;;  %v297_v32 = vpop.permute.xlu0 %296 }
  0xe1   : > { %v331_v35 = vmul.f32 %v297_v32, %v278_v33 }
  0xe2   : > { %358 = vperm.xlu1 %670, %v333_v31  }
  0xe3   : > { %v312_v34 = vpop.permute.xlu1 %311 }
  0xe4   : > { %v334_v36 = vmul.f32 %v312_v34, %v277_v24  ;;  %v301_v37 = vpop.permute.xlu0 %300 }
  0xe5   : > { %v332_v40 = vmul.f32 %v301_v37, %v279_v38 }
  0xe6   : > { %361 = vperm.xlu0 %669, %v334_v36   ;;  %352 = vperm.xlu1 %670, %v331_v35   ;;  %v447_v36 = vld [vmem:[%s1079_s4] sm:$0x1] }
  0xe7   : > { %v316_v39 = vpop.permute.xlu1 %315 }
  0xe8   : > { %v335_v41 = vmul.f32 %v316_v39, %v278_v33 }
  0xea   : > { %364 = vperm.xlu0 %669, %v335_v41   ;;  %355 = vperm.xlu1 %670, %v332_v40  }
  0xeb   : > { %v320_v42 = vpop.permute.xlu1 %319 }
  0xec   : > { %v336_v43 = vmul.f32 %v320_v42, %v279_v38 }
  0xee   : > { %367 = vperm.xlu0 %669, %v336_v43  }
  0xf2   : > { %429 = vbcast.lane.b32.xlu0 %v598_v44, 256 }
 0x159   : > { %v350_v45 = vpop.permute.xlu1 %349 }
 0x15a   : > { %v347_v47 = vpop.permute.xlu0 %346  ;;  %v379_v60 = vrot.slane %v350_v45, %v378_v54 }
 0x15b   : > { %v374_v61 = vrot.slane %v347_v47, %v373_v55 }
 0x15d   : > { %v359_v48 = vpop.permute.xlu1 %358  ;;  %v381_v12 = vsel %vm380_vm0, %v379_v60, %v374_v61 }
 0x15e   : > { %v399_v7 = vrot.slane %v359_v48, %v373_v55 }
 0x161   : > { %v353_v52 = vpop.permute.xlu1 %352  ;;  %v362_v53 = vpop.permute.xlu0 %361 }
 0x162   : > { %v403_v62 = vrot.slane %v362_v53, %v378_v54  ;;  %v386_v63 = vrot.slane %v353_v52, %v385_v56 }
 0x164   : > { %v404_v15 = vsel %vm380_vm0, %v403_v62, %v399_v7  ;;  %v388_v17 = vsel %vm387_vm1, %v386_v63, %v381_v12 }
 0x165   : > { %v356_v58 = vpop.permute.xlu1 %355  ;;  %v365_v59 = vpop.permute.xlu0 %364 }
 0x166   : > { %v408_v3 = vrot.slane %v365_v59, %v385_v56  ;;  %v393_v10 = vrot.slane %v356_v58, %v392_v57 }
 0x168   : > { %v409_v18 = vsel %vm387_vm1, %v408_v3, %v404_v15  ;;  %v395_v19 = vsel %vm394_vm2, %v393_v10, %v388_v17 }
 0x169   : > { %v368_v11 = vpop.permute.xlu0 %367 }
 0x16a   : > { %v413_v16 = vrot.slane %v368_v11, %v392_v57 }
 0x16c   : > { %v414_v20 = vsel %vm394_vm2, %v413_v16, %v409_v18 }
 0x16d   : > { %v416_v21 = vsel %vm415_vm3, %v414_v20, %v395_v19  ;;  %v430_v23 = vpop.permute.xlu0 %429 }
 0x16e   : > { %v419_v22 = vsel %vm418_vm4, %v416_v21, 0.0 }
 0x16f   : > { %420 = vadd.xlane.f32.xlu1 %v419_v22 }
 0x1f8   : > { %v421_v24 = vpop.xlane.xlu1 %420 }
 0x1f9   : > { %v432_v25 = vadd.f32 %v430_v23, %v421_v24 }
 0x1fb   : > { %v433_v26 = vmax.f32 %v432_v25, 0.0 }
 0x1fd   : > { %436 = vperm.xlu0 %669, %v433_v26  }
 0x278   : > { %v437_v28 = vpop.permute.xlu0 %436 }
 0x279   : > { %v439_v29 = vmul.f32 %v437_v28, %v281_v27 }
 0x27b   : > { %v440_v30 = vsel %vm418_vm4, %v439_v29, 0.0 }
 0x27c   : > { %v441_v31 = vrot.slane %v440_v30, 4 }
 0x27e   : > { %v442_v32 = vadd.f32 %v441_v31, %v440_v30 }
 0x280   : > { %v443_v33 = vrot.slane %v442_v32, 2 }
 0x282   : > { %v444_v34 = vadd.f32 %v443_v33, %v442_v32 }
 0x284   : > { %v445_v35 = vrot.slane %v444_v34, 1 }
 0x286   : > { %v446_v37 = vadd.f32 %v445_v35, %v444_v34 }
 0x288   : > { %v448_v38 = vadd.f32 %v447_v36, %v446_v37 }
 0x28a   : > { %v599_v39 = vmul.f32 -1.442695, %v448_v38 }
 0x28c   : > { %671 = vpow2.f32 %v599_v39 }
 0x299   : > { %v672_v40 = vpop.eup %671 }
 0x29a   : > { %v452_v41 = vadd.f32 1.0, %v672_v40 }
 0x29c   : > { %673 = vrcp.f32 %v452_v41 }
 0x2a9   : > { %v674_v42 = vpop.eup %673 }
 0x2aa   : > { %v458_v43 = vrot.slane %v674_v42, %v285_v14 }
 0x2ac   : > { %460 = vbcast.lane.b32.xlu0 %v458_v43, 256 }
 0x2b0   : > { %464 = vbcast.lane.b32.xlu0 %v458_v43, 264 }
 0x2b4   : > { %468 = vbcast.lane.b32.xlu0 %v458_v43, 272 }
 0x2b8   : > { %472 = vbcast.lane.b32.xlu0 %v458_v43, 280 }
 0x31e   : > { %v461_v44 = vpop.permute.xlu0 %460 }
 0x31f   : > { %v474_v45 = vmul.f32 %v461_v44, %v975_v2  ;;  %v475_v46 = vmul.f32 %v461_v44, %v979_v4 }
 0x321   : > { %482 = vst [vmem:[%s255_s11] sm:$0xff] %v474_v45  ;;  %483 = vst [vmem:[%s255_s11 + $0x8] sm:$0xff] %v475_v46 }
 0x322   : > { %v465_v47 = vpop.permute.xlu0 %464 }
 0x323   : > { %v476_v48 = vmul.f32 %v465_v47, %v987_v8  ;;  %v477_v13 = vmul.f32 %v465_v47, %v989_v9 }
 0x325   : > { %484 = vst [vmem:[%s255_s11 + $0x10] sm:$0xff] %v476_v48  ;;  %485 = vst [vmem:[%s255_s11 + $0x18] sm:$0xff] %v477_v13 }
 0x326   : > { %v469_v14 = vpop.permute.xlu0 %468 }
 0x327   : > { %v478_v49 = vmul.f32 %v469_v14, %v971_v0  ;;  %v479_v2 = vmul.f32 %v469_v14, %v973_v1 }
 0x329   : > { %486 = vst [vmem:[%s255_s11 + $0x20] sm:$0xff] %v478_v49  ;;  %487 = vst [vmem:[%s255_s11 + $0x28] sm:$0xff] %v479_v2 }
 0x32a   : > { %v473_v4 = vpop.permute.xlu0 %472 }
 0x32b   : > { %v480_v8 = vmul.f32 %v473_v4, %v981_v5  ;;  %v481_v0 = vmul.f32 %v473_v4, %v983_v6 }
 0x32d   : > { %488 = vst [vmem:[%s255_s11 + $0x30] sm:$0xff] %v480_v8  ;;  %489 = vst [vmem:[%s255_s11 + $0x38] sm:$0xff] %v481_v0 }
 0x32e   : > { %742 = shalt.err (!%p739_p0)
}
 0x32f   : > { %s743_s7 = scalar_lea.hbm %s1030_s9, 1024  ;;  %s747_s8 = scalar_lea.hbm %s1080_s5, 2048 }
 0x330   : > { %p744_p4 = scmp.ne.s32.totalorder %s1030_s9, %s743_s7  ;;  %p748_p6 = scmp.lt.s32.totalorder %s1030_s9, %s1080_s5 }
 0x331   : > { %p749_p13 = scmp.lt.s32.totalorder %s747_s8, %s743_s7 }
 0x332   : > { %p745_p11 = pnand %p744_p4, %p1097_p1 }
 0x333   : > { %p750_p3 = por %p749_p13, %p748_p6 }
 0x334   : > { %p746_p5 = pneg %p745_p11 }
 0x336   : > { %p751_p12 = pnand %p750_p3, %p746_p5 }
 0x338   : > { %754 = shalt.err (!%p751_p12)
}
 0x339   : > { %s805_s26 = smov 256   ;;  %s806_s28 = smov 16  }
 0x33a   : > { %613 = dma.vmem_to_hbm [thread:$0]  (%p1097_p1), %s1025_s23, 1024, %s1030_s9, %s491_s22, %s805_s26, %s805_s26, %s806_s28  }
 0x33b PF: > { %s519_s14 = sand.u32 1, %s785_s18   ;;  %p1098_p7 = scmp.ne.s32.totalorder %s1088_s6, 0 }
 0x33c   : > { %p1099_p8 = scmp.ge.s32.totalorder %s797_s21, 2  ;;  %s520_s15 = scalar_lea.sflag [#allocation4], %s519_s14 }
 0x33e   : > { %p624_p9 = pnand %p1099_p8, %p1098_p7 }
 0x340   : > { %p625_p10 = pneg %p624_p9 }
 0x342   : > { %780 = dma.done.wait (%p625_p10), %s520_s15, 1024  }
 0x343   : > { %782 = vsyncadd (%p625_p10), %s520_s15, 4294966272  ;;  %p19_p2 = scmp.ge.s32.totalorder %s862_s24, 4   ;;  %s1100_s18 = smov %s789_s19 }
 0x344   : > { %s1101_s19 = smov %s793_s20  ;;  %s1102_s20 = smov %s874_s27 }
 0x345   : > { %s1103_s21 = smov %s862_s24  ;;  %21 = sbr.rel (!%p19_p2) target bundleno = 6 (0x6), region = 89 }
 0x34a   :  { %525 = vsyncpa [#allocation3], 1 }
 0x34b   :  { %527 = vsyncpa [#allocation3 + $0x1], 1 }
 0x34c   :  { %528 = vsyncpa [#allocation6], 1 }
 0x34d   :  { %529 = vsyncpa [#allocation4], 1 }
 0x34e   :  { %531 = vsyncpa [#allocation4 + $0x1], 1 }

</bundles_post_ra>
